<compile_context>
chip_gen: v5e
topology: v5e:2x2
jax: 0.10.0
libtpu: 0.0.40
codegen_flags: <defaults>
</compile_context>

<pallas_src>
import jax
import jax.numpy as jnp
from jax.experimental import pallas as pl
from jax.experimental.pallas import tpu as pltpu


def _round_up(x, m):
    return ((x + m - 1) // m) * m


def _discriminator_kernel(x_ref, w1_ref, b1_ref, w2_ref, b2_ref, w3_ref, b3_ref,
                          out_ref, acc_ref):
    """One (batch-tile, K-tile) grid step.

    Layer-1 partial products accumulate in f32 VMEM scratch across the K axis;
    layers 2/3 + sigmoid run once, on the last K step.
    """
    k = pl.program_id(1)

    @pl.when(k == 0)
    def _():
        acc_ref[...] = jnp.zeros_like(acc_ref)

    # ---- Linear(img_area, 512): K-tiled bf16 matmul, f32 accumulate (MXU) ----
    acc_ref[...] += jnp.dot(x_ref[...], w1_ref[...],
                            preferred_element_type=jnp.float32)

    @pl.when(k == pl.num_programs(1) - 1)
    def _():
        h1 = acc_ref[...] + b1_ref[...]                      # (TB, 512) + (1, 512)
        h1 = jnp.where(h1 > 0, h1, 0.2 * h1)                 # LeakyReLU(0.2)

        # ---- Linear(512, 256) + LeakyReLU(0.2) ----
        h2 = jnp.dot(h1.astype(jnp.bfloat16), w2_ref[...],
                     preferred_element_type=jnp.float32)
        h2 = h2 + b2_ref[...]                                # (TB, 256) + (1, 256)
        h2 = jnp.where(h2 > 0, h2, 0.2 * h2)

        # ---- Linear(256, 1) + Sigmoid: VPU multiply + lane reduce (N=1) ----
        logit = jnp.sum(h2 * w3_ref[...], axis=-1, keepdims=True) + b3_ref[...]
        out_ref[...] = jax.nn.sigmoid(logit).astype(out_ref.dtype)


def discriminator_forward(img, params, *, tb=None, tk=None):
    """img: (B, C, H, W) float32, NCHW like PyTorch. Returns (B, 1) validity."""
    w1, b1, w2, b2, w3, b3 = params
    B = img.shape[0]
    x = img.reshape(B, -1)                                   # same as torch .view
    D = x.shape[1]
    H1, H2 = w1.shape[1], w2.shape[1]                        # 512, 256

    # ---- tile sizes: >=8 sublane rows on batch, 128-lane multiples on K ----
    if tb is None:
        tb = min(512, _round_up(B, 8))
    if tk is None:
        tk = min(1024, _round_up(D, 128))
    Bp = _round_up(B, tb)
    Dp = _round_up(D, tk)
    nb, nk = Bp // tb, Dp // tk

    # ---- cast matmul operands to bf16; pad with zeros only when needed ----
    xb = x.astype(jnp.bfloat16)
    if Bp != B or Dp != D:
        xb = jnp.pad(xb, ((0, Bp - B), (0, Dp - D)))
    w1b = w1.astype(jnp.bfloat16)
    if Dp != D:
        w1b = jnp.pad(w1b, ((0, Dp - D), (0, 0)))
    w2b = w2.astype(jnp.bfloat16)
    b1r = b1.reshape(1, H1).astype(jnp.float32)
    b2r = b2.reshape(1, H2).astype(jnp.float32)
    w3r = w3.reshape(1, H2).astype(jnp.float32)              # final layer on VPU
    b3r = b3.reshape(1, 1).astype(jnp.float32)

    flops = 2 * Bp * (Dp * H1 + H1 * H2 + H2)
    bytes_accessed = (xb.size * 2 + nb * w1b.size * 2 + w2b.size * 2
                      + (b1r.size + b2r.size + w3r.size + b3r.size) * 4
                      + Bp * 4)

    out = pl.pallas_call(
        _discriminator_kernel,
        out_shape=jax.ShapeDtypeStruct((Bp, 1), jnp.float32),
        grid=(nb, nk),
        in_specs=[
            pl.BlockSpec((tb, tk), lambda i, k: (i, k)),      # x tile
            pl.BlockSpec((tk, H1), lambda i, k: (k, 0)),      # w1 K-tile
            pl.BlockSpec((1, H1), lambda i, k: (0, 0)),       # b1 (resident)
            pl.BlockSpec((H1, H2), lambda i, k: (0, 0)),      # w2 (resident)
            pl.BlockSpec((1, H2), lambda i, k: (0, 0)),       # b2 (resident)
            pl.BlockSpec((1, H2), lambda i, k: (0, 0)),       # w3 row (resident)
            pl.BlockSpec((1, 1), lambda i, k: (0, 0)),        # b3 (resident)
        ],
        out_specs=pl.BlockSpec((tb, 1), lambda i, k: (i, 0)),
        scratch_shapes=[pltpu.VMEM((tb, H1), jnp.float32)],   # layer-1 accumulator
        compiler_params=pltpu.CompilerParams(
            dimension_semantics=("parallel", "arbitrary"),
            vmem_limit_bytes=32 << 20),
        cost_estimate=pl.CostEstimate(
            flops=flops, transcendentals=Bp, bytes_accessed=bytes_accessed),
    )(xb, w1b, b1r, w2b, b2r, w3r, b3r)

    return out[:B]


def init_params(key, img_area):
    """Deterministic init matching PyTorch nn.Linear default:
    U(-1/sqrt(fan_in), 1/sqrt(fan_in)) for both weight and bias."""
    dims = [(img_area, 512), (512, 256), (256, 1)]
    params = []
    keys = jax.random.split(key, 2 * len(dims))
    for i, (fan_in, fan_out) in enumerate(dims):
        bound = 1.0 / jnp.sqrt(fan_in)
        w = jax.random.uniform(keys[2 * i], (fan_in, fan_out),
                               minval=-bound, maxval=bound, dtype=jnp.float32)
        b = jax.random.uniform(keys[2 * i + 1], (fan_out,),
                               minval=-bound, maxval=bound, dtype=jnp.float32)
        params += [w, b]
    return tuple(params)


def _reference_forward(img, params, matmul_dtype=jnp.float32):
    """Pure-JAX reference; matmul_dtype=bf16 mirrors the kernel's precision."""
    w1, b1, w2, b2, w3, b3 = params
    x = img.reshape(img.shape[0], -1)
    h1 = jnp.dot(x.astype(matmul_dtype), w1.astype(matmul_dtype),
                 preferred_element_type=jnp.float32) + b1
    h1 = jnp.where(h1 > 0, h1, 0.2 * h1)
    h2 = jnp.dot(h1.astype(matmul_dtype), w2.astype(matmul_dtype),
                 preferred_element_type=jnp.float32) + b2
    h2 = jnp.where(h2 > 0, h2, 0.2 * h2)
    return jax.nn.sigmoid(h2 @ w3 + b3)


if __name__ == "__main__":
    # Small shapes consistent with the module: batch=2, channels=1, img_size=16
    # => img_area = 256.
    B, C, Hs, Ws = 2, 1, 16, 16
    key = jax.random.PRNGKey(0)
    k_img, k_par = jax.random.split(key)

    img = jax.random.normal(k_img, (B, C, Hs, Ws), dtype=jnp.float32)
    params = init_params(k_par, C * Hs * Ws)

    ref_bf16 = _reference_forward(img, params, matmul_dtype=jnp.bfloat16)
    ref_f32 = _reference_forward(img, params, matmul_dtype=jnp.float32)

    # Default tiling (single K step for this img_area).
    out = jax.block_until_ready(discriminator_forward(img, params))
    assert out.shape == (B, 1), out.shape
    assert jnp.allclose(out, ref_bf16, atol=1e-3, rtol=1e-3), (out, ref_bf16)
    assert jnp.allclose(out, ref_f32, atol=3e-2, rtol=3e-2), (out, ref_f32)

    # Force the multi-K-tile accumulation path (nk=2) to validate the reduction.
    out_tiled = jax.block_until_ready(
        discriminator_forward(img, params, tb=8, tk=128))
    assert out_tiled.shape == (B, 1), out_tiled.shape
    assert jnp.allclose(out_tiled, ref_bf16, atol=1e-3, rtol=1e-3), (out_tiled, ref_bf16)

    print("KERNEL_OK")
</pallas_src>

<mosaic_0001>
module attributes {stable_mosaic.version = 11 : i64} {
  func.func @_discriminator_kernel(%arg0: i32, %arg1: i32, %arg2: memref<8x256xbf16, #tpu.memory_space<vmem>>, %arg3: memref<256x512xbf16, #tpu.memory_space<vmem>>, %arg4: memref<1x512xf32, #tpu.memory_space<vmem>>, %arg5: memref<512x256xbf16, #tpu.memory_space<vmem>>, %arg6: memref<1x256xf32, #tpu.memory_space<vmem>>, %arg7: memref<1x256xf32, #tpu.memory_space<vmem>>, %arg8: memref<1x1xf32, #tpu.memory_space<vmem>>, %arg9: memref<8x1xf32, #tpu.memory_space<vmem>>, %arg10: memref<8x512xf32, #tpu.memory_space<vmem>>) attributes {dimension_semantics = [#tpu.dimension_semantics<parallel>, #tpu.dimension_semantics<arbitrary>], iteration_bounds = array<i64: 1, 1>, scalar_prefetch = 0 : i64, scratch_operands = 1 : i64, tpu.core_type = #tpu.core_type<tc>, window_params = [{transform_indices = @transform_0, window_bounds = array<i64: 8, 256>}, {transform_indices = @transform_1, window_bounds = array<i64: 256, 512>}, {pipeline_mode = #tpu.pipeline_mode<synchronous>, transform_indices = @transform_2, window_bounds = array<i64: 1, 512>}, {pipeline_mode = #tpu.pipeline_mode<synchronous>, transform_indices = @transform_3, window_bounds = array<i64: 512, 256>}, {pipeline_mode = #tpu.pipeline_mode<synchronous>, transform_indices = @transform_4, window_bounds = array<i64: 1, 256>}, {pipeline_mode = #tpu.pipeline_mode<synchronous>, transform_indices = @transform_5, window_bounds = array<i64: 1, 256>}, {pipeline_mode = #tpu.pipeline_mode<synchronous>, transform_indices = @transform_6, window_bounds = array<i64: 1, 1>}, {transform_indices = @transform_7, window_bounds = array<i64: 8, 1>}]} {
    %c0_i32 = arith.constant 0 : i32
    %0 = arith.cmpi eq, %arg1, %c0_i32 : i32
    %1 = arith.extui %0 : i1 to i32
    %c0_i32_0 = arith.constant 0 : i32
    %2 = arith.cmpi ne, %1, %c0_i32_0 : i32
    scf.if %2 {
      %cst_10 = arith.constant 0.000000e+00 : f32
      %12 = vector.broadcast %cst_10 : f32 to vector<8x512xf32>
      %c0_11 = arith.constant 0 : index
      %c0_12 = arith.constant 0 : index
      %13 = vector.load %arg10[%c0_11, %c0_12] : memref<8x512xf32, #tpu.memory_space<vmem>>, vector<8x512xf32>
      tpu.vector_store %arg10[%c0_11, %c0_12], %12 {strides = array<i32>} : memref<8x512xf32, #tpu.memory_space<vmem>>, vector<8x512xf32>,
    } else {
    }
    %c0 = arith.constant 0 : index
    %c0_1 = arith.constant 0 : index
    %3 = vector.load %arg10[%c0, %c0_1] : memref<8x512xf32, #tpu.memory_space<vmem>>, vector<8x512xf32>
    %c0_2 = arith.constant 0 : index
    %c0_3 = arith.constant 0 : index
    %4 = vector.load %arg2[%c0_2, %c0_3] : memref<8x256xbf16, #tpu.memory_space<vmem>>, vector<8x256xbf16>
    %c0_4 = arith.constant 0 : index
    %c0_5 = arith.constant 0 : index
    %5 = vector.load %arg3[%c0_4, %c0_5] : memref<256x512xbf16, #tpu.memory_space<vmem>>, vector<256x512xbf16>
    %cst = arith.constant dense<0.000000e+00> : vector<8x512xf32>
    %6 = tpu.matmul %4, %5, %cst {dimension_numbers = #tpu.dot_dimension_numbers<[1], [0], [0], [1], [0, 0, 1, 1], [], []>} : vector<8x256xbf16>, vector<256x512xbf16>, vector<8x512xf32> -> vector<8x512xf32>
    %7 = arith.addf %3, %6 : vector<8x512xf32>
    %c0_6 = arith.constant 0 : index
    %c0_7 = arith.constant 0 : index
    %8 = vector.load %arg10[%c0_6, %c0_7] : memref<8x512xf32, #tpu.memory_space<vmem>>, vector<8x512xf32>
    tpu.vector_store %arg10[%c0_6, %c0_7], %7 {strides = array<i32>} : memref<8x512xf32, #tpu.memory_space<vmem>>, vector<8x512xf32>,
    %c0_i32_8 = arith.constant 0 : i32
    %9 = arith.cmpi eq, %arg1, %c0_i32_8 : i32
    %10 = arith.extui %9 : i1 to i32
    %c0_i32_9 = arith.constant 0 : i32
    %11 = arith.cmpi ne, %10, %c0_i32_9 : i32
    scf.if %11 {
      %c0_10 = arith.constant 0 : index
      %c0_11 = arith.constant 0 : index
      %12 = vector.load %arg10[%c0_10, %c0_11] : memref<8x512xf32, #tpu.memory_space<vmem>>, vector<8x512xf32>
      %c0_12 = arith.constant 0 : index
      %c0_13 = arith.constant 0 : index
      %13 = vector.load %arg4[%c0_12, %c0_13] : memref<1x512xf32, #tpu.memory_space<vmem>>, vector<1x512xf32>
      %14 = vector.broadcast %13 : vector<1x512xf32> to vector<8x512xf32>
      %15 = arith.addf %12, %14 : vector<8x512xf32>
      %cst_14 = arith.constant 0.000000e+00 : f32
      %16 = vector.broadcast %cst_14 : f32 to vector<8x512xf32>
      %17 = arith.cmpf ogt, %15, %16 : vector<8x512xf32>
      %cst_15 = arith.constant 2.000000e-01 : f32
      %18 = vector.broadcast %cst_15 : f32 to vector<8x512xf32>
      %19 = arith.mulf %18, %15 : vector<8x512xf32>
      %20 = arith.select %17, %15, %19 : vector<8x512xi1>, vector<8x512xf32>
      %21 = arith.truncf %20 : vector<8x512xf32> to vector<8x512xbf16>
      %c0_16 = arith.constant 0 : index
      %c0_17 = arith.constant 0 : index
      %22 = vector.load %arg5[%c0_16, %c0_17] : memref<512x256xbf16, #tpu.memory_space<vmem>>, vector<512x256xbf16>
      %cst_18 = arith.constant dense<0.000000e+00> : vector<8x256xf32>
      %23 = tpu.matmul %21, %22, %cst_18 {dimension_numbers = #tpu.dot_dimension_numbers<[1], [0], [0], [1], [0, 0, 1, 1], [], []>} : vector<8x512xbf16>, vector<512x256xbf16>, vector<8x256xf32> -> vector<8x256xf32>
      %c0_19 = arith.constant 0 : index
      %c0_20 = arith.constant 0 : index
      %24 = vector.load %arg6[%c0_19, %c0_20] : memref<1x256xf32, #tpu.memory_space<vmem>>, vector<1x256xf32>
      %25 = vector.broadcast %24 : vector<1x256xf32> to vector<8x256xf32>
      %26 = arith.addf %23, %25 : vector<8x256xf32>
      %cst_21 = arith.constant 0.000000e+00 : f32
      %27 = vector.broadcast %cst_21 : f32 to vector<8x256xf32>
      %28 = arith.cmpf ogt, %26, %27 : vector<8x256xf32>
      %cst_22 = arith.constant 2.000000e-01 : f32
      %29 = vector.broadcast %cst_22 : f32 to vector<8x256xf32>
      %30 = arith.mulf %29, %26 : vector<8x256xf32>
      %31 = arith.select %28, %26, %30 : vector<8x256xi1>, vector<8x256xf32>
      %c0_23 = arith.constant 0 : index
      %c0_24 = arith.constant 0 : index
      %32 = vector.load %arg7[%c0_23, %c0_24] : memref<1x256xf32, #tpu.memory_space<vmem>>, vector<1x256xf32>
      %33 = vector.broadcast %32 : vector<1x256xf32> to vector<8x256xf32>
      %34 = arith.mulf %31, %33 : vector<8x256xf32>
      %cst_25 = arith.constant dense<0.000000e+00> : vector<8xf32>
      %35 = vector.multi_reduction <add>, %34, %cst_25 [1] : vector<8x256xf32> to vector<8xf32>
      %36 = vector.shape_cast %35 : vector<8xf32> to vector<8x1xf32>
      %c0_26 = arith.constant 0 : index
      %c0_27 = arith.constant 0 : index
      %37 = vector.load %arg8[%c0_26, %c0_27] : memref<1x1xf32, #tpu.memory_space<vmem>>, vector<1x1xf32>
      %38 = vector.broadcast %37 : vector<1x1xf32> to vector<8x1xf32>
      %39 = arith.addf %36, %38 : vector<8x1xf32>
      %40 = arith.negf %39 : vector<8x1xf32>
      %41 = math.exp %40 : vector<8x1xf32>
      %cst_28 = arith.constant 1.000000e+00 : f32
      %42 = vector.broadcast %cst_28 : f32 to vector<8x1xf32>
      %43 = arith.addf %42, %41 : vector<8x1xf32>
      %44 = arith.divf %42, %43 : vector<8x1xf32>
      %c0_29 = arith.constant 0 : index
      %c0_30 = arith.constant 0 : index
      %45 = vector.load %arg9[%c0_29, %c0_30] : memref<8x1xf32, #tpu.memory_space<vmem>>, vector<8x1xf32>
      tpu.vector_store %arg9[%c0_29, %c0_30], %44 {strides = array<i32>} : memref<8x1xf32, #tpu.memory_space<vmem>>, vector<8x1xf32>,
    } else {
    }
    return
  }
  func.func @transform_0(%arg0: i32, %arg1: i32) -> (i32, i32) {
    %c0_i32 = arith.constant 0 : i32
    return %arg0, %arg1 : i32, i32
  }
  func.func @transform_1(%arg0: i32, %arg1: i32) -> (i32, i32) {
    %c0_i32 = arith.constant 0 : i32
    %c0_i32_0 = arith.constant 0 : i32
    return %arg1, %c0_i32 : i32, i32
  }
  func.func @transform_2(%arg0: i32, %arg1: i32) -> (i32, i32) {
    %c0_i32 = arith.constant 0 : i32
    %c0_i32_0 = arith.constant 0 : i32
    %c0_i32_1 = arith.constant 0 : i32
    return %c0_i32, %c0_i32_0 : i32, i32
  }
  func.func @transform_3(%arg0: i32, %arg1: i32) -> (i32, i32) {
    %c0_i32 = arith.constant 0 : i32
    %c0_i32_0 = arith.constant 0 : i32
    %c0_i32_1 = arith.constant 0 : i32
    return %c0_i32, %c0_i32_0 : i32, i32
  }
  func.func @transform_4(%arg0: i32, %arg1: i32) -> (i32, i32) {
    %c0_i32 = arith.constant 0 : i32
    %c0_i32_0 = arith.constant 0 : i32
    %c0_i32_1 = arith.constant 0 : i32
    return %c0_i32, %c0_i32_0 : i32, i32
  }
  func.func @transform_5(%arg0: i32, %arg1: i32) -> (i32, i32) {
    %c0_i32 = arith.constant 0 : i32
    %c0_i32_0 = arith.constant 0 : i32
    %c0_i32_1 = arith.constant 0 : i32
    return %c0_i32, %c0_i32_0 : i32, i32
  }
  func.func @transform_6(%arg0: i32, %arg1: i32) -> (i32, i32) {
    %c0_i32 = arith.constant 0 : i32
    %c0_i32_0 = arith.constant 0 : i32
    %c0_i32_1 = arith.constant 0 : i32
    return %c0_i32, %c0_i32_0 : i32, i32
  }
  func.func @transform_7(%arg0: i32, %arg1: i32) -> (i32, i32) {
    %c0_i32 = arith.constant 0 : i32
    %c0_i32_0 = arith.constant 0 : i32
    return %arg0, %c0_i32 : i32, i32
  }
}

</mosaic_0001>

<bundles_post_ra>
// kernel: tpu_custom_call.1
= control target key start
LH: loop header
LB: loop body
LE: loop exit
PB: predicated region body
PF: predicated region fallthrough
CT: control target
= control target key end

     0   :  { %s2030_s0 = inlined_call_operand.hbm [shape: bf16[8,256], index: 0, kind: input, shape index: {}]   ;;  %s2031_s1 = inlined_call_operand.hbm [shape: bf16[256,512], index: 1, kind: input, shape index: {}]   ;;  %s2032_s2 = inlined_call_operand.hbm [shape: f32[1,512], index: 2, kind: input, shape index: {}]   ;;  %s2033_s3 = inlined_call_operand.hbm [shape: bf16[512,256], index: 3, kind: input, shape index: {}]   ;;  %s2034_s4 = inlined_call_operand.vmem [shape: f32[1,256], index: 4, kind: input, shape index: {}]   ;;  %s2035_s5 = inlined_call_operand.vmem [shape: f32[1,256], index: 5, kind: input, shape index: {}]   ;;  %s2036_s6 = inlined_call_operand.<no memory space> [shape: f32[1,1], index: 6, kind: input, shape index: {}]   ;;  %s2037_s7 = inlined_call_operand.vmem [shape: f32[8,1], index: 7, kind: output, shape index: {}]  }
   0x1   :  { %v12_v0 = vstv %s2036_s6 }
   0x2   :  { %13 = vst [vmem:[#allocation3] sm:$0x1] %v12_v0 }
   0x3   :  { %14 = vsyncpa [#allocation5], 0 }
   0x4   :  { %15 = vsyncpa [#allocation7], 0  ;;  %s32_s28 = sshll.u32 %s2031_s1, 4  ;;  %s33_s28 = int_to_ptr.hbm [resolvable:$true] %s32_s28 }
   0x5   :  { %16 = vsyncpa [#allocation10], 0  ;;  %s1940_s29 = smov [#allocation6]   ;;  %s22_s10 = sshll.u32 %s2030_s0, 4  ;;  %s23_s10 = int_to_ptr.hbm [resolvable:$true] %s22_s10 }
   0x6   :  { %s34_s30 = sshll.u32 %s1940_s29, 4  ;;  %s1941_s11 = smov 256   ;;  %s35_s30 = int_to_ptr.vmem [resolvable:$true] %s34_s30 }
   0x7   :  { %s1942_s12 = smov 16   ;;  %s1943_s6 = smov [#allocation4]  }
   0x8   :  { %40 = dma.hbm_to_vmem [thread:$0]  %s33_s28, 8192, %s35_s30, [#allocation7], %s1941_s11, %s1941_s11, %s1942_s12  }
   0x9   :  { %s24_s13 = sshll.u32 %s1943_s6, 4  ;;  %s46_s16 = sshll.u32 %s2032_s2, 4  ;;  %s25_s13 = int_to_ptr.vmem [resolvable:$true] %s24_s13  ;;  %s47_s16 = int_to_ptr.hbm [resolvable:$true] %s46_s16 }
   0xa   :  { %27 = dma.hbm_to_vmem [thread:$0]  %s23_s10, 128, %s25_s13, [#allocation5]  }
   0xb   :  { %s56_s18 = sshll.u32 %s2033_s3, 4  ;;  %s1944_s19 = smov [#allocation8]   ;;  %s57_s18 = int_to_ptr.hbm [resolvable:$true] %s56_s18 }
   0xc   :  { %s48_s20 = sshll.u32 %s1944_s19, 4  ;;  %s1945_s0 = smov [#allocation9]   ;;  %s49_s20 = int_to_ptr.vmem [resolvable:$true] %s48_s20 }
   0xd   :  { %51 = dma.hbm_to_vmem [thread:$0]  %s47_s16, 64, %s49_s20, [#allocation7]  }
   0xe   :  { %s58_s21 = sshll.u32 %s1945_s0, 4  ;;  %s1946_s22 = smov 128   ;;  %s59_s21 = int_to_ptr.vmem [resolvable:$true] %s58_s21 }
   0xf   :  { %s1947_s23 = smov 8  }
  0x10   :  { %64 = dma.hbm_to_vmem [thread:$0]  %s57_s18, 8192, %s59_s21, [#allocation10], %s1946_s22, %s1946_s22, %s1947_s23  }
  0x11   :  { %1934 = dma.done.wait [#allocation5], 128  }
  0x12   :  { %1935 = vsyncadd [#allocation5], 4294967168 }
  0x13   :  { %1936 = dma.done.wait [#allocation7], 8256  }
  0x14   :  { %1937 = vsyncadd [#allocation7], 4294959040 }
  0x15   :  { %1938 = dma.done.wait [#allocation10], 8192  }
  0x16   :  { %1939 = vsyncadd [#allocation10], 4294959104  ;;  %v1298_v1 = vld [vmem:[#allocation6 + $0xe0] sm:$0xf]  ;;  %v1727_v2 = vld [vmem:[#allocation6 + $0xec] sm:$0xf0] }
  0x17   :  { %v1426_v3 = vld [vmem:[#allocation6 + $0x1e0] sm:$0xf]  ;;  %v1299_v4 = vor.u32 %v1727_v2, %v1298_v1  ;;  %v1759_v5 = vld [vmem:[#allocation6 + $0x1ec] sm:$0xf0]  ;;  %v1725_v6 = vld [vmem:[#allocation6 + $0xe4] sm:$0xf] }
  0x18   :  { %v1300_v7 = vld [vmem:[#allocation6 + $0xf0] sm:$0xf0]  ;;  %v1427_v8 = vor.u32 %v1759_v5, %v1426_v3  ;;  %v1757_v10 = vld [vmem:[#allocation6 + $0x1e4] sm:$0xf]  ;;  %v1282_v12 = vld [vmem:[#allocation6 + $0xc0] sm:$0xf] }
  0x19   :  { %v1303_v9 = vor.u32 %v1725_v6, %v1300_v7  ;;  %v1428_v11 = vld [vmem:[#allocation6 + $0x1f0] sm:$0xf0]  ;;  %491 = vmatpush.bf16.msra.mxu0 %v1299_v4  ;;  %v1723_v14 = vld [vmem:[#allocation6 + $0xcc] sm:$0xf0]  ;;  %v1410_v15 = vld [vmem:[#allocation6 + $0x1c0] sm:$0xf] }
  0x1a   :  { %v1431_v13 = vor.u32 %v1757_v10, %v1428_v11  ;;  %v1755_v16 = vld [vmem:[#allocation6 + $0x1cc] sm:$0xf0]  ;;  %504 = vmatpush.bf16.msra.mxu1 %v1427_v8  ;;  %v1283_v17 = vor.u32 %v1723_v14, %v1282_v12  ;;  %v1721_v19 = vld [vmem:[#allocation6 + $0xc4] sm:$0xf]  ;;  %v1284_v20 = vld [vmem:[#allocation6 + $0xd0] sm:$0xf0] }
  0x1b   :  { %517 = vmatpush.bf16.msra.mxu2 %v1303_v9  ;;  %v1411_v18 = vor.u32 %v1755_v16, %v1410_v15  ;;  %v1753_v21 = vld [vmem:[#allocation6 + $0x1c4] sm:$0xf]  ;;  %v1287_v22 = vor.u32 %v1721_v19, %v1284_v20  ;;  %v1412_v23 = vld [vmem:[#allocation6 + $0x1d0] sm:$0xf0]  ;;  %v1266_v24 = vld [vmem:[#allocation6 + $0xa0] sm:$0xf] }
  0x1c   :  { %530 = vmatpush.bf16.msra.mxu3 %v1431_v13  ;;  %v1719_v25 = vld [vmem:[#allocation6 + $0xac] sm:$0xf0]  ;;  %v1415_v26 = vor.u32 %v1753_v21, %v1412_v23  ;;  %v1394_v27 = vld [vmem:[#allocation6 + $0x1a0] sm:$0xf]  ;;  %v1717_v29 = vld [vmem:[#allocation6 + $0xa4] sm:$0xf] }
  0x1d   :  { %v1751_v28 = vld [vmem:[#allocation6 + $0x1ac] sm:$0xf0]  ;;  %492 = vmatpush.bf16.msra.mxu0 %v1283_v17  ;;  %v1267_v30 = vor.u32 %v1719_v25, %v1266_v24  ;;  %v1268_v31 = vld [vmem:[#allocation6 + $0xb0] sm:$0xf0]  ;;  %v1749_v32 = vld [vmem:[#allocation6 + $0x1a4] sm:$0xf] }
  0x1e   :  { %v1396_v33 = vld [vmem:[#allocation6 + $0x1b0] sm:$0xf0]  ;;  %505 = vmatpush.bf16.msra.mxu1 %v1411_v18  ;;  %v1395_v34 = vor.u32 %v1751_v28, %v1394_v27  ;;  %v1271_v35 = vor.u32 %v1717_v29, %v1268_v31  ;;  %v1250_v36 = vld [vmem:[#allocation6 + $0x80] sm:$0xf]  ;;  %v1715_v37 = vld [vmem:[#allocation6 + $0x8c] sm:$0xf0] }
  0x1f   :  { %518 = vmatpush.bf16.msra.mxu2 %v1287_v22  ;;  %v1378_v38 = vld [vmem:[#allocation6 + $0x180] sm:$0xf]  ;;  %v1399_v39 = vor.u32 %v1749_v32, %v1396_v33  ;;  %v1747_v40 = vld [vmem:[#allocation6 + $0x18c] sm:$0xf0]  ;;  %v1713_v41 = vld [vmem:[#allocation6 + $0x84] sm:$0xf]  ;;  %v1251_v45 = vor.u32 %v1715_v37, %v1250_v36 }
  0x20   :  { %531 = vmatpush.bf16.msra.mxu3 %v1415_v26  ;;  %v1252_v42 = vld [vmem:[#allocation6 + $0x90] sm:$0xf0]  ;;  %v1745_v43 = vld [vmem:[#allocation6 + $0x184] sm:$0xf]  ;;  %v1379_v46 = vor.u32 %v1747_v40, %v1378_v38  ;;  %v1234_v48 = vld [vmem:[#allocation6 + $0x60] sm:$0xf] }
  0x21   :  { %v1380_v44 = vld [vmem:[#allocation6 + $0x190] sm:$0xf0]  ;;  %493 = vmatpush.bf16.msra.mxu0 %v1267_v30  ;;  %v1255_v47 = vor.u32 %v1713_v41, %v1252_v42  ;;  %v1711_v49 = vld [vmem:[#allocation6 + $0x6c] sm:$0xf0]  ;;  %v1362_v50 = vld [vmem:[#allocation6 + $0x160] sm:$0xf] }
  0x22   :  { %506 = vmatpush.bf16.msra.mxu1 %v1395_v34  ;;  %v1383_v51 = vor.u32 %v1745_v43, %v1380_v44  ;;  %v1743_v52 = vld [vmem:[#allocation6 + $0x16c] sm:$0xf0]  ;;  %v1709_v53 = vld [vmem:[#allocation6 + $0x64] sm:$0xf]  ;;  %v1236_v54 = vld [vmem:[#allocation6 + $0x70] sm:$0xf0]  ;;  %v1235_v57 = vor.u32 %v1711_v49, %v1234_v48 }
  0x23   :  { %519 = vmatpush.bf16.msra.mxu2 %v1271_v35  ;;  %v1741_v55 = vld [vmem:[#allocation6 + $0x164] sm:$0xf]  ;;  %v1364_v56 = vld [vmem:[#allocation6 + $0x170] sm:$0xf0]  ;;  %v1363_v58 = vor.u32 %v1743_v52, %v1362_v50  ;;  %v1239_v59 = vor.u32 %v1709_v53, %v1236_v54  ;;  %v1218_v60 = vld [vmem:[#allocation6 + $0x40] sm:$0xf] }
  0x24   :  { %532 = vmatpush.bf16.msra.mxu3 %v1399_v39  ;;  %v1707_v61 = vld [vmem:[#allocation6 + $0x4c] sm:$0xf0]  ;;  %v1346_v62 = vld [vmem:[#allocation6 + $0x140] sm:$0xf]  ;;  %v1367_v63 = vor.u32 %v1741_v55, %v1364_v56  ;;  %v1705_v1 = vld [vmem:[#allocation6 + $0x44] sm:$0xf] }
  0x25   :  { %494 = vmatpush.bf16.msra.mxu0 %v1251_v45  ;;  %v1739_v0 = vld [vmem:[#allocation6 + $0x14c] sm:$0xf0]  ;;  %v1220_v2 = vld [vmem:[#allocation6 + $0x50] sm:$0xf0]  ;;  %v1737_v3 = vld [vmem:[#allocation6 + $0x144] sm:$0xf]  ;;  %v1219_v5 = vor.u32 %v1707_v61, %v1218_v60 }
  0x26   :  { %507 = vmatpush.bf16.msra.mxu1 %v1379_v46  ;;  %v1348_v4 = vld [vmem:[#allocation6 + $0x150] sm:$0xf0]  ;;  %v1347_v6 = vor.u32 %v1739_v0, %v1346_v62  ;;  %v1223_v7 = vor.u32 %v1705_v1, %v1220_v2  ;;  %v1202_v8 = vld [vmem:[#allocation6 + $0x20] sm:$0xf]  ;;  %v1703_v9 = vld [vmem:[#allocation6 + $0x2c] sm:$0xf0] }
  0x27   :  { %520 = vmatpush.bf16.msra.mxu2 %v1255_v47  ;;  %v1330_v10 = vld [vmem:[#allocation6 + $0x120] sm:$0xf]  ;;  %v1351_v11 = vor.u32 %v1737_v3, %v1348_v4  ;;  %v1735_v12 = vld [vmem:[#allocation6 + $0x12c] sm:$0xf0]  ;;  %v1701_v13 = vld [vmem:[#allocation6 + $0x24] sm:$0xf]  ;;  %v1203_v17 = vor.u32 %v1703_v9, %v1202_v8 }
  0x28   :  { %533 = vmatpush.bf16.msra.mxu3 %v1383_v51  ;;  %v1204_v14 = vld [vmem:[#allocation6 + $0x30] sm:$0xf0]  ;;  %v1733_v15 = vld [vmem:[#allocation6 + $0x124] sm:$0xf]  ;;  %v1186_v18 = vld [vmem:[#allocation6] sm:$0xf]  ;;  %v1331_v21 = vor.u32 %v1735_v12, %v1330_v10 }
  0x29   :  { %495 = vmatpush.bf16.msra.mxu0 %v1235_v57  ;;  %v1332_v16 = vld [vmem:[#allocation6 + $0x130] sm:$0xf0]  ;;  %v1699_v19 = vld [vmem:[#allocation6 + $0xc] sm:$0xf0]  ;;  %v1314_v20 = vld [vmem:[#allocation6 + $0x100] sm:$0xf]  ;;  %v1207_v22 = vor.u32 %v1701_v13, %v1204_v14 }
  0x2a   :  { %508 = vmatpush.bf16.msra.mxu1 %v1363_v58  ;;  %v1731_v23 = vld [vmem:[#allocation6 + $0x10c] sm:$0xf0]  ;;  %v1697_v24 = vld [vmem:[#allocation6 + $0x4] sm:$0xf]  ;;  %v99_v25 = vld [vmem:[#allocation4] sm:$0xff]  ;;  %v1335_v26 = vor.u32 %v1733_v15, %v1332_v16  ;;  %v1187_v33 = vor.u32 %v1699_v19, %v1186_v18  ;;  %vm1175_vm9 = vcmask 7168  }
  0x2b   :  { %521 = vmatpush.bf16.msra.mxu2 %v1239_v59  ;;  %v1188_v27 = vld [vmem:[#allocation6 + $0x10] sm:$0xf0]  ;;  %v1729_v28 = vld [vmem:[#allocation6 + $0x104] sm:$0xf]  ;;  %v1306_v30 = vld [vmem:[#allocation6 + $0xe8] sm:$0xf]  ;;  %v165_v37 = vunpack.c.l.b16 %v99_v25  ;;  %v1315_v38 = vor.u32 %v1731_v23, %v1314_v20  ;;  %v166_v42 = vunpack.c.h.b16 %v99_v25 }
  0x2c   :  { %534 = vmatpush.bf16.msra.mxu3 %v1367_v63  ;;  %v1316_v29 = vld [vmem:[#allocation6 + $0x110] sm:$0xf0]  ;;  %v1728_v31 = vld [vmem:[#allocation6 + $0xf4] sm:$0xf0]  ;;  %v1434_v32 = vld [vmem:[#allocation6 + $0x1e8] sm:$0xf]  ;;  %v1191_v39 = vor.u32 %v1697_v24, %v1188_v27 }
  0x2d   :  { %496 = vmatpush.bf16.msra.mxu0 %v1219_v5  ;;  %v1760_v34 = vld [vmem:[#allocation6 + $0x1f4] sm:$0xf0]  ;;  %v1726_v35 = vld [vmem:[#allocation6 + $0xec] sm:$0xf]  ;;  %v1308_v36 = vld [vmem:[#allocation6 + $0xf8] sm:$0xf0]  ;;  %v1319_v43 = vor.u32 %v1729_v28, %v1316_v29  ;;  %v1307_v44 = vor.u32 %v1728_v31, %v1306_v30  ;;  %v2003_v51 = vpack.c.b16 %v165_v37, %v165_v37  ;;  %v2005_v55 = vpack.c.b16 %v166_v42, %v166_v42 }
  0x2e   :  { %509 = vmatpush.bf16.msra.mxu1 %v1347_v6  ;;  %v1758_v40 = vld [vmem:[#allocation6 + $0x1ec] sm:$0xf]  ;;  %v1436_v41 = vld [vmem:[#allocation6 + $0x1f8] sm:$0xf0]  ;;  %v1435_v45 = vor.u32 %v1760_v34, %v1434_v32  ;;  %v1311_v46 = vor.u32 %v1726_v35, %v1308_v36  ;;  %v1290_v47 = vld [vmem:[#allocation6 + $0xc8] sm:$0xf] }
  0x2f   :  { %522 = vmatpush.bf16.msra.mxu2 %v1223_v7  ;;  %v1724_v48 = vld [vmem:[#allocation6 + $0xd4] sm:$0xf0]  ;;  %v1418_v49 = vld [vmem:[#allocation6 + $0x1c8] sm:$0xf]  ;;  %v1439_v50 = vor.u32 %v1758_v40, %v1436_v41  ;;  %v1722_v53 = vld [vmem:[#allocation6 + $0xcc] sm:$0xf] }
  0x30   :  { %535 = vmatpush.bf16.msra.mxu3 %v1351_v11  ;;  %v1756_v52 = vld [vmem:[#allocation6 + $0x1d4] sm:$0xf0]  ;;  %v1292_v54 = vld [vmem:[#allocation6 + $0xd8] sm:$0xf0]  ;;  %v1754_v56 = vld [vmem:[#allocation6 + $0x1cc] sm:$0xf]  ;;  %v1291_v58 = vor.u32 %v1724_v48, %v1290_v47 }
  0x31   :  { %497 = vmatpush.bf16.msra.mxu0 %v1203_v17  ;;  %v1420_v57 = vld [vmem:[#allocation6 + $0x1d8] sm:$0xf0]  ;;  %v1419_v59 = vor.u32 %v1756_v52, %v1418_v49  ;;  %v1295_v60 = vor.u32 %v1722_v53, %v1292_v54  ;;  %v1274_v61 = vld [vmem:[#allocation6 + $0xa8] sm:$0xf]  ;;  %v1720_v62 = vld [vmem:[#allocation6 + $0xb4] sm:$0xf0] }
  0x32   :  { %510 = vmatpush.bf16.msra.mxu1 %v1331_v21  ;;  %v1402_v63 = vld [vmem:[#allocation6 + $0x1a8] sm:$0xf]  ;;  %v1423_v0 = vor.u32 %v1754_v56, %v1420_v57  ;;  %v1752_v1 = vld [vmem:[#allocation6 + $0x1b4] sm:$0xf0]  ;;  %v1718_v2 = vld [vmem:[#allocation6 + $0xac] sm:$0xf]  ;;  %v1275_v6 = vor.u32 %v1720_v62, %v1274_v61 }
  0x33   :  { %523 = vmatpush.bf16.msra.mxu2 %v1207_v22  ;;  %v1276_v3 = vld [vmem:[#allocation6 + $0xb8] sm:$0xf0]  ;;  %v1750_v4 = vld [vmem:[#allocation6 + $0x1ac] sm:$0xf]  ;;  %v1403_v7 = vor.u32 %v1752_v1, %v1402_v63  ;;  %v1258_v9 = vld [vmem:[#allocation6 + $0x88] sm:$0xf] }
  0x34   :  { %536 = vmatpush.bf16.msra.mxu3 %v1335_v26  ;;  %v1404_v5 = vld [vmem:[#allocation6 + $0x1b8] sm:$0xf0]  ;;  %v1279_v8 = vor.u32 %v1718_v2, %v1276_v3  ;;  %v1716_v10 = vld [vmem:[#allocation6 + $0x94] sm:$0xf0]  ;;  %v1386_v11 = vld [vmem:[#allocation6 + $0x188] sm:$0xf] }
  0x35   :  { %498 = vmatpush.bf16.msra.mxu0 %v1187_v33  ;;  %v1407_v12 = vor.u32 %v1750_v4, %v1404_v5  ;;  %v1748_v13 = vld [vmem:[#allocation6 + $0x194] sm:$0xf0]  ;;  %v1714_v14 = vld [vmem:[#allocation6 + $0x8c] sm:$0xf]  ;;  %v1260_v15 = vld [vmem:[#allocation6 + $0x98] sm:$0xf0]  ;;  %v1259_v18 = vor.u32 %v1716_v10, %v1258_v9 }
  0x36   :  { %511 = vmatpush.bf16.msra.mxu1 %v1315_v38  ;;  %v1746_v16 = vld [vmem:[#allocation6 + $0x18c] sm:$0xf]  ;;  %v1388_v17 = vld [vmem:[#allocation6 + $0x198] sm:$0xf0]  ;;  %v1387_v19 = vor.u32 %v1748_v13, %v1386_v11  ;;  %v1263_v20 = vor.u32 %v1714_v14, %v1260_v15  ;;  %v1242_v21 = vld [vmem:[#allocation6 + $0x68] sm:$0xf] }
  0x37   :  { %524 = vmatpush.bf16.msra.mxu2 %v1191_v39  ;;  %v1712_v22 = vld [vmem:[#allocation6 + $0x74] sm:$0xf0]  ;;  %v1370_v23 = vld [vmem:[#allocation6 + $0x168] sm:$0xf]  ;;  %v1391_v24 = vor.u32 %v1746_v16, %v1388_v17  ;;  %v1710_v26 = vld [vmem:[#allocation6 + $0x6c] sm:$0xf] }
  0x38   :  { %537 = vmatpush.bf16.msra.mxu3 %v1319_v43  ;;  %499 = vmatmul.bf16.vlgmr.msra.gmra.mxu0 %v2003_v51  ;;  %v1744_v25 = vld [vmem:[#allocation6 + $0x174] sm:$0xf0]  ;;  %v1244_v27 = vld [vmem:[#allocation6 + $0x78] sm:$0xf0]  ;;  %v1742_v28 = vld [vmem:[#allocation6 + $0x16c] sm:$0xf]  ;;  %v1243_v30 = vor.u32 %v1712_v22, %v1242_v21 }
  0x39   :  { %543 = vmatpush.bf16.msrb.mxu0 %v1307_v44  ;;  %512 = vmatmul.bf16.vlgmr.msra.gmra.mxu1 %v2005_v55  ;;  %v1372_v29 = vld [vmem:[#allocation6 + $0x178] sm:$0xf0]  ;;  %v1371_v31 = vor.u32 %v1744_v25, %v1370_v23  ;;  %v1247_v32 = vor.u32 %v1710_v26, %v1244_v27  ;;  %v1226_v33 = vld [vmem:[#allocation6 + $0x48] sm:$0xf]  ;;  %v1708_v34 = vld [vmem:[#allocation6 + $0x54] sm:$0xf0] }
  0x3a   :  { %556 = vmatpush.bf16.msrb.mxu1 %v1435_v45  ;;  %525 = vmatmul.bf16.vlgmr.msra.gmra.mxu2 %v2003_v51  ;;  %v1354_v35 = vld [vmem:[#allocation6 + $0x148] sm:$0xf]  ;;  %v1375_v36 = vor.u32 %v1742_v28, %v1372_v29  ;;  %v1740_v37 = vld [vmem:[#allocation6 + $0x154] sm:$0xf0]  ;;  %v1706_v38 = vld [vmem:[#allocation6 + $0x4c] sm:$0xf]  ;;  %v1227_v42 = vor.u32 %v1708_v34, %v1226_v33 }
  0x3b   :  { %569 = vmatpush.bf16.msrb.mxu2 %v1311_v46  ;;  %538 = vmatmul.bf16.vlgmr.msra.gmra.mxu3 %v2005_v55  ;;  %v1228_v39 = vld [vmem:[#allocation6 + $0x58] sm:$0xf0]  ;;  %v1738_v40 = vld [vmem:[#allocation6 + $0x14c] sm:$0xf]  ;;  %v1355_v43 = vor.u32 %v1740_v37, %v1354_v35  ;;  %v1210_v45 = vld [vmem:[#allocation6 + $0x28] sm:$0xf] }
  0x3c   :  { %582 = vmatpush.bf16.msrb.mxu3 %v1439_v50  ;;  %v1356_v41 = vld [vmem:[#allocation6 + $0x158] sm:$0xf0]  ;;  %v1231_v44 = vor.u32 %v1706_v38, %v1228_v39  ;;  %v1704_v46 = vld [vmem:[#allocation6 + $0x34] sm:$0xf0]  ;;  %v1338_v47 = vld [vmem:[#allocation6 + $0x128] sm:$0xf] }
  0x3d   :  { %544 = vmatpush.bf16.msrb.mxu0 %v1291_v58  ;;  %v1359_v48 = vor.u32 %v1738_v40, %v1356_v41  ;;  %v1736_v49 = vld [vmem:[#allocation6 + $0x134] sm:$0xf0]  ;;  %v1702_v50 = vld [vmem:[#allocation6 + $0x2c] sm:$0xf]  ;;  %v1212_v52 = vld [vmem:[#allocation6 + $0x38] sm:$0xf0]  ;;  %v1211_v56 = vor.u32 %v1704_v46, %v1210_v45 }
  0x3e   :  { %557 = vmatpush.bf16.msrb.mxu1 %v1419_v59  ;;  %v1734_v53 = vld [vmem:[#allocation6 + $0x12c] sm:$0xf]  ;;  %v1340_v54 = vld [vmem:[#allocation6 + $0x138] sm:$0xf0]  ;;  %v1194_v57 = vld [vmem:[#allocation6 + $0x8] sm:$0xf]  ;;  %v1339_v58 = vor.u32 %v1736_v49, %v1338_v47  ;;  %v1215_v59 = vor.u32 %v1702_v50, %v1212_v52 }
  0x3f   :  { %570 = vmatpush.bf16.msrb.mxu2 %v1295_v60  ;;  %v1700_v60 = vld [vmem:[#allocation6 + $0x14] sm:$0xf0]  ;;  %v1322_v61 = vld [vmem:[#allocation6 + $0x108] sm:$0xf]  ;;  %v1343_v63 = vor.u32 %v1734_v53, %v1340_v54  ;;  %v1196_v1 = vld [vmem:[#allocation6 + $0x18] sm:$0xf0] }
  0x40   :  { %583 = vmatpush.bf16.msrb.mxu3 %v1423_v0  ;;  %v1732_v62 = vld [vmem:[#allocation6 + $0x114] sm:$0xf0]  ;;  %v1698_v0 = vld [vmem:[#allocation6 + $0xc] sm:$0xf]  ;;  %v1324_v3 = vld [vmem:[#allocation6 + $0x118] sm:$0xf0] }
  0x41   :  { %545 = vmatpush.bf16.msrb.mxu0 %v1275_v6  ;;  %v1730_v2 = vld [vmem:[#allocation6 + $0x10c] sm:$0xf]  ;;  %v1498_v4 = vld [vmem:[#allocation9 + $0x70] sm:$0xf]  ;;  %v1776_v5 = vld [vmem:[#allocation9 + $0x74] sm:$0xf0]  ;;  %v1195_v6 = vor.u32 %v1700_v60, %v1194_v57  ;;  %v1323_v9 = vor.u32 %v1732_v62, %v1322_v61  ;;  %v1199_v10 = vor.u32 %v1698_v0, %v1196_v1 }
  0x42   :  { %558 = vmatpush.bf16.msrb.mxu1 %v1403_v7  ;;  %v1562_v7 = vld [vmem:[#allocation9 + $0xf0] sm:$0xf]  ;;  %v1327_v11 = vor.u32 %v1730_v2, %v1324_v3  ;;  %v1808_v14 = vld [vmem:[#allocation9 + $0x174] sm:$0xf0]  ;;  %v1490_v15 = vld [vmem:[#allocation9 + $0x60] sm:$0xf] }
  0x43   :  { %571 = vmatpush.bf16.msrb.mxu2 %v1279_v8  ;;  %v1792_v8 = vld [vmem:[#allocation9 + $0xf4] sm:$0xf0]  ;;  %v1626_v13 = vld [vmem:[#allocation9 + $0x170] sm:$0xf]  ;;  %v1774_v16 = vld [vmem:[#allocation9 + $0x64] sm:$0xf0] }
  0x44   :  { %584 = vmatpush.bf16.msrb.mxu3 %v1407_v12  ;;  %v1499_v12 = vor.u32 %v1776_v5, %v1498_v4  ;;  %v1563_v17 = vor.u32 %v1792_v8, %v1562_v7  ;;  %v1491_v21 = vor.u32 %v1774_v16, %v1490_v15  ;;  %v1618_v22 = vld [vmem:[#allocation9 + $0x160] sm:$0xf]  ;;  %v1806_v23 = vld [vmem:[#allocation9 + $0x164] sm:$0xf0]  ;;  %v1772_v25 = vld [vmem:[#allocation9 + $0x54] sm:$0xf0] }
  0x45   :  { %546 = vmatpush.bf16.msrb.mxu0 %v1259_v18  ;;  %v1554_v18 = vld [vmem:[#allocation9 + $0xe0] sm:$0xf]  ;;  %v1546_v27 = vld [vmem:[#allocation9 + $0xd0] sm:$0xf]  ;;  %v1788_v28 = vld [vmem:[#allocation9 + $0xd4] sm:$0xf0]  ;;  %v1619_v29 = vor.u32 %v1806_v23, %v1618_v22 }
  0x46   :  { %559 = vmatpush.bf16.msrb.mxu1 %v1387_v19  ;;  %v1790_v19 = vld [vmem:[#allocation9 + $0xe4] sm:$0xf0]  ;;  %v1547_v33 = vor.u32 %v1788_v28, %v1546_v27  ;;  %v1538_v34 = vld [vmem:[#allocation9 + $0xc0] sm:$0xf]  ;;  %v1466_v37 = vld [vmem:[#allocation9 + $0x30] sm:$0xf] }
  0x47   :  { %572 = vmatpush.bf16.msrb.mxu2 %v1263_v20  ;;  %v1627_v20 = vor.u32 %v1808_v14, %v1626_v13  ;;  %v1555_v26 = vor.u32 %v1790_v19, %v1554_v18  ;;  %v1786_v35 = vld [vmem:[#allocation9 + $0xc4] sm:$0xf0]  ;;  %v1530_v39 = vld [vmem:[#allocation9 + $0xb0] sm:$0xf]  ;;  %v1784_v40 = vld [vmem:[#allocation9 + $0xb4] sm:$0xf0] }
  0x48   :  { %585 = vmatpush.bf16.msrb.mxu3 %v1391_v24  ;;  %v1482_v24 = vld [vmem:[#allocation9 + $0x50] sm:$0xf]  ;;  %v1539_v38 = vor.u32 %v1786_v35, %v1538_v34  ;;  %v1458_v41 = vld [vmem:[#allocation9 + $0x20] sm:$0xf]  ;;  %v1782_v45 = vld [vmem:[#allocation9 + $0xa4] sm:$0xf0] }
  0x49   :  { %547 = vmatpush.bf16.msrb.mxu0 %v1243_v30  ;;  %v1483_v30 = vor.u32 %v1772_v25, %v1482_v24  ;;  %v1450_v47 = vld [vmem:[#allocation9 + $0x10] sm:$0xf]  ;;  %v1780_v52 = vld [vmem:[#allocation9 + $0x94] sm:$0xf0]  ;;  %v1442_v54 = vld [vmem:[#allocation9] sm:$0xf] }
  0x4a   :  { %560 = vmatpush.bf16.msrb.mxu1 %v1371_v31  ;;  %v1474_v31 = vld [vmem:[#allocation9 + $0x40] sm:$0xf]  ;;  %v1514_v50 = vld [vmem:[#allocation9 + $0x90] sm:$0xf]  ;;  %v1773_v62 = vld [vmem:[#allocation9 + $0x64] sm:$0xf] }
  0x4b   :  { %573 = vmatpush.bf16.msrb.mxu2 %v1247_v32  ;;  %v1770_v32 = vld [vmem:[#allocation9 + $0x44] sm:$0xf0]  ;;  %v1515_v57 = vor.u32 %v1780_v52, %v1514_v50  ;;  %v1506_v1 = vld [vmem:[#allocation9 + $0x80] sm:$0xf]  ;;  %v1690_v4 = vld [vmem:[#allocation9 + $0x1f0] sm:$0xf] }
  0x4c   :  { %586 = vmatpush.bf16.msrb.mxu3 %v1375_v36  ;;  %v1475_v36 = vor.u32 %v1770_v32, %v1474_v31  ;;  %v1778_v2 = vld [vmem:[#allocation9 + $0x84] sm:$0xf0]  ;;  %v1824_v5 = vld [vmem:[#allocation9 + $0x1f4] sm:$0xf0]  ;;  %v1564_v8 = vld [vmem:[#allocation9 + $0xf8] sm:$0xf0] }
  0x4d   :  { %548 = vmatpush.bf16.msrb.mxu0 %v1227_v42  ;;  %v1766_v42 = vld [vmem:[#allocation9 + $0x24] sm:$0xf0]  ;;  %v1507_v3 = vor.u32 %v1778_v2, %v1506_v1  ;;  %v1691_v7 = vor.u32 %v1824_v5, %v1690_v4  ;;  %v1771_v13 = vld [vmem:[#allocation9 + $0x54] sm:$0xf]  ;;  %v1484_v14 = vld [vmem:[#allocation9 + $0x58] sm:$0xf0] }
  0x4e   :  { %561 = vmatpush.bf16.msrb.mxu1 %v1355_v43  ;;  %v1531_v43 = vor.u32 %v1784_v40, %v1530_v39  ;;  %v1459_v46 = vor.u32 %v1766_v42, %v1458_v41  ;;  %v1487_v15 = vor.u32 %v1771_v13, %v1484_v14  ;;  %v1682_v16 = vld [vmem:[#allocation9 + $0x1e0] sm:$0xf]  ;;  %v1789_v18 = vld [vmem:[#allocation9 + $0xe4] sm:$0xf]  ;;  %v1802_v23 = vld [vmem:[#allocation9 + $0x144] sm:$0xf0] }
  0x4f   :  { %574 = vmatpush.bf16.msrb.mxu2 %v1231_v44  ;;  %v1522_v44 = vld [vmem:[#allocation9 + $0xa0] sm:$0xf]  ;;  %v1769_v24 = vld [vmem:[#allocation9 + $0x44] sm:$0xf]  ;;  %v1674_v28 = vld [vmem:[#allocation9 + $0x1d0] sm:$0xf] }
  0x50   :  { %587 = vmatpush.bf16.msrb.mxu3 %v1359_v48  ;;  %v1764_v48 = vld [vmem:[#allocation9 + $0x14] sm:$0xf0]  ;;  %v1523_v49 = vor.u32 %v1782_v45, %v1522_v44  ;;  %v1602_v22 = vld [vmem:[#allocation9 + $0x140] sm:$0xf]  ;;  %v1548_v32 = vld [vmem:[#allocation9 + $0xd8] sm:$0xf0] }
  0x51   :  { %549 = vmatpush.bf16.msrb.mxu0 %v1211_v56  ;;  %v1451_v53 = vor.u32 %v1764_v48, %v1450_v47  ;;  %v1762_v56 = vld [vmem:[#allocation9 + $0x4] sm:$0xf0]  ;;  %v1603_v25 = vor.u32 %v1802_v23, %v1602_v22  ;;  %v1594_v34 = vld [vmem:[#allocation9 + $0x130] sm:$0xf]  ;;  %v1800_v35 = vld [vmem:[#allocation9 + $0x134] sm:$0xf0] }
  0x52   :  { %562 = vmatpush.bf16.msrb.mxu1 %v1339_v58  ;;  %v1775_v58 = vld [vmem:[#allocation9 + $0x74] sm:$0xf]  ;;  %v1443_v60 = vor.u32 %v1762_v56, %v1442_v54  ;;  %v1666_v39 = vld [vmem:[#allocation9 + $0x1c0] sm:$0xf]  ;;  %v1818_v40 = vld [vmem:[#allocation9 + $0x1c4] sm:$0xf0] }
  0x53   :  { %575 = vmatpush.bf16.msrb.mxu2 %v1215_v59  ;;  %v1500_v59 = vld [vmem:[#allocation9 + $0x78] sm:$0xf0]  ;;  %v1667_v41 = vor.u32 %v1818_v40, %v1666_v39  ;;  %v1540_v42 = vld [vmem:[#allocation9 + $0xc8] sm:$0xf0]  ;;  %v1586_v44 = vld [vmem:[#allocation9 + $0x120] sm:$0xf] }
  0x54   :  { %588 = vmatpush.bf16.msrb.mxu3 %v1343_v63  ;;  %v1503_v61 = vor.u32 %v1775_v58, %v1500_v59  ;;  %v1492_v63 = vld [vmem:[#allocation9 + $0x68] sm:$0xf0]  ;;  %v1798_v45 = vld [vmem:[#allocation9 + $0x124] sm:$0xf0]  ;;  %v1658_v50 = vld [vmem:[#allocation9 + $0x1b0] sm:$0xf] }
  0x55   :  { %550 = vmatpush.bf16.msrb.mxu0 %v1195_v6  ;;  %v1495_v0 = vor.u32 %v1773_v62, %v1492_v63  ;;  %v1791_v6 = vld [vmem:[#allocation9 + $0xf4] sm:$0xf]  ;;  %v1587_v47 = vor.u32 %v1798_v45, %v1586_v44  ;;  %v1460_v48 = vld [vmem:[#allocation9 + $0x28] sm:$0xf0]  ;;  %v1816_v52 = vld [vmem:[#allocation9 + $0x1b4] sm:$0xf0] }
  0x56   :  { %563 = vmatpush.bf16.msrb.mxu1 %v1323_v9  ;;  %v1567_v9 = vor.u32 %v1791_v6, %v1564_v8  ;;  %v1659_v54 = vor.u32 %v1816_v52, %v1658_v50  ;;  %v1532_v56 = vld [vmem:[#allocation9 + $0xb8] sm:$0xf0]  ;;  %v1578_v58 = vld [vmem:[#allocation9 + $0x110] sm:$0xf]  ;;  %v1796_v59 = vld [vmem:[#allocation9 + $0x114] sm:$0xf0] }
  0x57   :  { %576 = vmatpush.bf16.msrb.mxu2 %v1199_v10  ;;  %v1610_v10 = vld [vmem:[#allocation9 + $0x150] sm:$0xf]  ;;  %v1452_v62 = vld [vmem:[#allocation9 + $0x18] sm:$0xf0]  ;;  %v1650_v63 = vld [vmem:[#allocation9 + $0x1a0] sm:$0xf] }
  0x58   :  { %589 = vmatpush.bf16.msrb.mxu3 %v1327_v11  ;;  %551 = vmatmul.bf16.vlgmr.msrb.gmra.mxu0 %v2003_v51  ;;  %v1804_v11 = vld [vmem:[#allocation9 + $0x154] sm:$0xf0]  ;;  %v1524_v4 = vld [vmem:[#allocation9 + $0xa8] sm:$0xf0]  ;;  %v1570_v5 = vld [vmem:[#allocation9 + $0x100] sm:$0xf] }
  0x59   :  { %1030 = vmatpush.bf16.msra.mxu0 %v1499_v12  ;;  %564 = vmatmul.bf16.vlgmr.msrb.gmra.mxu1 %v2005_v55  ;;  %v1611_v12 = vor.u32 %v1804_v11, %v1610_v10  ;;  %v1761_v8 = vld [vmem:[#allocation9 + $0x4] sm:$0xf]  ;;  %v1628_v13 = vld [vmem:[#allocation9 + $0x178] sm:$0xf0]  ;;  %v1642_v14 = vld [vmem:[#allocation9 + $0x190] sm:$0xf] }
  0x5a   :  { %1043 = vmatpush.bf16.msra.mxu1 %v1563_v17  ;;  %577 = vmatmul.bf16.vlgmr.msrb.gmra.mxu2 %v2003_v51  ;;  %v1768_v51 = vld [vmem:[#allocation9 + $0x34] sm:$0xf0]  ;;  %v1822_v17 = vld [vmem:[#allocation9 + $0x1e4] sm:$0xf0]  ;;  %v1805_v22 = vld [vmem:[#allocation9 + $0x164] sm:$0xf] }
  0x5b   :  { %590 = vmatmul.bf16.vlgmr.msrb.gmra.mxu3 %v2005_v55  ;;  %1056 = vmatpush.bf16.msra.mxu2 %v1627_v20  ;;  %v1467_v55 = vor.u32 %v1768_v51, %v1466_v37  ;;  %v1683_v19 = vor.u32 %v1822_v17, %v1682_v16  ;;  %v1556_v20 = vld [vmem:[#allocation9 + $0xe8] sm:$0xf0]  ;;  %v1595_v37 = vor.u32 %v1800_v35, %v1594_v34  ;;  %v1468_v51 = vld [vmem:[#allocation9 + $0x38] sm:$0xf0]  ;;  %v1812_v16 = vld [vmem:[#allocation9 + $0x194] sm:$0xf0] }
  0x5c   :  { %1069 = vmatpush.bf16.msra.mxu3 %v1691_v7  ;;  %v1794_v7 = vld [vmem:[#allocation9 + $0x104] sm:$0xf0]  ;;  %v1779_v17 = vld [vmem:[#allocation9 + $0x94] sm:$0xf]  ;;  %v1620_v23 = vld [vmem:[#allocation9 + $0x168] sm:$0xf0] }
  0x5d   :  { %1031 = vmatpush.bf16.msra.mxu0 %v1491_v21  ;;  %v1559_v21 = vor.u32 %v1789_v18, %v1556_v20  ;;  %v1571_v10 = vor.u32 %v1794_v7, %v1570_v5  ;;  %v1516_v18 = vld [vmem:[#allocation9 + $0x98] sm:$0xf0]  ;;  %v1803_v34 = vld [vmem:[#allocation9 + $0x154] sm:$0xf]  ;;  %v1821_v39 = vld [vmem:[#allocation9 + $0x1e4] sm:$0xf] }
  0x5e   :  { %1044 = vmatpush.bf16.msra.mxu1 %v1555_v26  ;;  %v1476_v26 = vld [vmem:[#allocation9 + $0x48] sm:$0xf0]  ;;  %v1519_v20 = vor.u32 %v1779_v17, %v1516_v18  ;;  %v1612_v35 = vld [vmem:[#allocation9 + $0x158] sm:$0xf0]  ;;  %v1815_v7 = vld [vmem:[#allocation9 + $0x1b4] sm:$0xf] }
  0x5f   :  { %1057 = vmatpush.bf16.msra.mxu2 %v1619_v29  ;;  %v1479_v27 = vor.u32 %v1769_v24, %v1476_v26  ;;  %v1820_v29 = vld [vmem:[#allocation9 + $0x1d4] sm:$0xf0]  ;;  %v1623_v24 = vor.u32 %v1805_v22, %v1620_v23  ;;  %v1810_v26 = vld [vmem:[#allocation9 + $0x184] sm:$0xf0]  ;;  %v1684_v40 = vld [vmem:[#allocation9 + $0x1e8] sm:$0xf0] }
  0x60   :  { %1070 = vmatpush.bf16.msra.mxu3 %v1683_v19  ;;  %v1675_v31 = vor.u32 %v1820_v29, %v1674_v28  ;;  %v1643_v19 = vor.u32 %v1812_v16, %v1642_v14  ;;  %v1508_v29 = vld [vmem:[#allocation9 + $0x88] sm:$0xf0]  ;;  %v1813_v14 = vld [vmem:[#allocation9 + $0x1a4] sm:$0xf] }
  0x61   :  { %1032 = vmatpush.bf16.msra.mxu0 %v1483_v30  ;;  %v1787_v30 = vld [vmem:[#allocation9 + $0xd4] sm:$0xf]  ;;  %v1652_v18 = vld [vmem:[#allocation9 + $0x1a8] sm:$0xf0] }
  0x62   :  { %1045 = vmatpush.bf16.msra.mxu1 %v1547_v33  ;;  %v1551_v33 = vor.u32 %v1787_v30, %v1548_v32  ;;  %v1823_v30 = vld [vmem:[#allocation9 + $0x1f4] sm:$0xf]  ;;  %v1655_v22 = vor.u32 %v1813_v14, %v1652_v18 }
  0x63   :  { %1058 = vmatpush.bf16.msra.mxu2 %v1611_v12  ;;  %v1807_v12 = vld [vmem:[#allocation9 + $0x174] sm:$0xf] }
  0x64   :  { %1071 = vmatpush.bf16.msra.mxu3 %v1675_v31  ;;  %v1692_v31 = vld [vmem:[#allocation9 + $0x1f8] sm:$0xf0] }
  0x65   :  { %1033 = vmatpush.bf16.msra.mxu0 %v1475_v36  ;;  %v1767_v36 = vld [vmem:[#allocation9 + $0x34] sm:$0xf] }
  0x66   :  { %1046 = vmatpush.bf16.msra.mxu1 %v1539_v38  ;;  %v1471_v38 = vor.u32 %v1767_v36, %v1468_v51  ;;  %v1615_v51 = vor.u32 %v1803_v34, %v1612_v35 }
  0x67   :  { %1059 = vmatpush.bf16.msra.mxu2 %v1603_v25  ;;  %v1634_v25 = vld [vmem:[#allocation9 + $0x180] sm:$0xf] }
  0x68   :  { %1072 = vmatpush.bf16.msra.mxu3 %v1667_v41  ;;  %v1635_v28 = vor.u32 %v1810_v26, %v1634_v25  ;;  %v1687_v41 = vor.u32 %v1821_v39, %v1684_v40  ;;  %v1644_v25 = vld [vmem:[#allocation9 + $0x198] sm:$0xf0] }
  0x69   :  { %1034 = vmatpush.bf16.msra.mxu0 %v1467_v55  ;;  %v1785_v55 = vld [vmem:[#allocation9 + $0xc4] sm:$0xf] }
  0x6a   :  { %1047 = vmatpush.bf16.msra.mxu1 %v1531_v43  ;;  %v1543_v43 = vor.u32 %v1785_v55, %v1540_v42  ;;  %v1801_v42 = vld [vmem:[#allocation9 + $0x144] sm:$0xf] }
  0x6b   :  { %1060 = vmatpush.bf16.msra.mxu2 %v1595_v37 }
  0x6c   :  { %1073 = vmatpush.bf16.msra.mxu3 %v1659_v54  ;;  %v1596_v54 = vld [vmem:[#allocation9 + $0x138] sm:$0xf0] }
  0x6d   :  { %1035 = vmatpush.bf16.msra.mxu0 %v1459_v46  ;;  %v1765_v46 = vld [vmem:[#allocation9 + $0x24] sm:$0xf] }
  0x6e   :  { %1048 = vmatpush.bf16.msra.mxu1 %v1523_v49  ;;  %v1463_v49 = vor.u32 %v1765_v46, %v1460_v48  ;;  %v1819_v46 = vld [vmem:[#allocation9 + $0x1d4] sm:$0xf] }
  0x6f   :  { %1061 = vmatpush.bf16.msra.mxu2 %v1587_v47  ;;  %v1676_v47 = vld [vmem:[#allocation9 + $0x1d8] sm:$0xf0] }
  0x71   :  { %1036 = vmatpush.bf16.msra.mxu0 %v1451_v53  ;;  %v1783_v53 = vld [vmem:[#allocation9 + $0xb4] sm:$0xf] }
  0x72   :  { %1049 = vmatpush.bf16.msra.mxu1 %v1515_v57  ;;  %v1535_v57 = vor.u32 %v1783_v53, %v1532_v56  ;;  %v1799_v53 = vld [vmem:[#allocation9 + $0x134] sm:$0xf] }
  0x75   :  { %1037 = vmatpush.bf16.msra.mxu0 %v1443_v60  ;;  %v1763_v60 = vld [vmem:[#allocation9 + $0x14] sm:$0xf] }
  0x76   :  { %1050 = vmatpush.bf16.msra.mxu1 %v1507_v3  ;;  %v1455_v1 = vor.u32 %v1763_v60, %v1452_v62  ;;  %v1781_v3 = vld [vmem:[#allocation9 + $0xa4] sm:$0xf] }
  0x77   :  { %v1527_v6 = vor.u32 %v1781_v3, %v1524_v4  ;;  %v1797_v3 = vld [vmem:[#allocation9 + $0x124] sm:$0xf]  ;;  %v1588_v4 = vld [vmem:[#allocation9 + $0x128] sm:$0xf0] }
  0x78   :  { %v1591_v5 = vor.u32 %v1797_v3, %v1588_v4 }
  0x79   :  { %1082 = vmatpush.bf16.msrb.mxu0 %v1503_v61  ;;  %v1579_v61 = vor.u32 %v1796_v59, %v1578_v58  ;;  %v1599_v59 = vor.u32 %v1799_v53, %v1596_v54 }
  0x7a   :  { %1095 = vmatpush.bf16.msrb.mxu1 %v1567_v9  ;;  %v1444_v9 = vld [vmem:[#allocation9 + $0x8] sm:$0xf0] }
  0x7b   :  { %1062 = vmatpush.bf16.msra.mxu2 %v1579_v61  ;;  %v1447_v11 = vor.u32 %v1761_v8, %v1444_v9  ;;  %v1660_v8 = vld [vmem:[#allocation9 + $0x1b8] sm:$0xf0] }
  0x7d   :  { %1083 = vmatpush.bf16.msrb.mxu0 %v1495_v0  ;;  %v1814_v0 = vld [vmem:[#allocation9 + $0x1a4] sm:$0xf0] }
  0x7e   :  { %1096 = vmatpush.bf16.msrb.mxu1 %v1559_v21  ;;  %v1651_v2 = vor.u32 %v1814_v0, %v1650_v63  ;;  %v2015_v21 = vld [vmem:[#allocation8] sm:$0xf]  ;;  %v1817_v63 = vld [vmem:[#allocation9 + $0x1c4] sm:$0xf]  ;;  %v1668_v0 = vld [vmem:[#allocation9 + $0x1c8] sm:$0xf0] }
  0x7f   :  { %1063 = vmatpush.bf16.msra.mxu2 %v1571_v10  ;;  %v612_v37 = vperm.slane %v2015_v21, 0  ;;  %v613_v52 = vperm.slane %v2015_v21, 1 }
  0x80   :  { %1074 = vmatpush.bf16.msra.mxu3 %v1651_v2 }
  0x81   :  { %1084 = vmatpush.bf16.msrb.mxu0 %v1487_v15  ;;  %v1631_v15 = vor.u32 %v1807_v12, %v1628_v13  ;;  %v1795_v12 = vld [vmem:[#allocation9 + $0x114] sm:$0xf]  ;;  %v1580_v13 = vld [vmem:[#allocation9 + $0x118] sm:$0xf0] }
  0x82   :  { %1097 = vmatpush.bf16.msrb.mxu1 %v1551_v33  ;;  %v1695_v33 = vor.u32 %v1823_v30, %v1692_v31  ;;  %v1583_v17 = vor.u32 %v1795_v12, %v1580_v13  ;;  %v614_v31 = vperm.slane %v2015_v21, 2 }
  0x83   :  { %1108 = vmatpush.bf16.msrb.mxu2 %v1631_v15 }
  0x84   :  { %1075 = vmatpush.bf16.msra.mxu3 %v1643_v19  ;;  %v1793_v19 = vld [vmem:[#allocation9 + $0x104] sm:$0xf] }
  0x85   :  { %1085 = vmatpush.bf16.msrb.mxu0 %v1479_v27  ;;  %v1777_v27 = vld [vmem:[#allocation9 + $0x84] sm:$0xf] }
  0x86   :  { %1098 = vmatpush.bf16.msrb.mxu1 %v1543_v43  ;;  %v1511_v32 = vor.u32 %v1777_v27, %v1508_v29  ;;  %v1604_v43 = vld [vmem:[#allocation9 + $0x148] sm:$0xf0]  ;;  %v1809_v27 = vld [vmem:[#allocation9 + $0x184] sm:$0xf] }
  0x87   :  { %1109 = vmatpush.bf16.msrb.mxu2 %v1623_v24  ;;  %v1607_v45 = vor.u32 %v1801_v42, %v1604_v43  ;;  %v1811_v24 = vld [vmem:[#allocation9 + $0x194] sm:$0xf] }
  0x88   :  { %1076 = vmatpush.bf16.msra.mxu3 %v1635_v28  ;;  %v1647_v26 = vor.u32 %v1811_v24, %v1644_v25  ;;  %v1636_v28 = vld [vmem:[#allocation9 + $0x188] sm:$0xf0] }
  0x89   :  { %1086 = vmatpush.bf16.msrb.mxu0 %v1471_v38  ;;  %v1639_v29 = vor.u32 %v1809_v27, %v1636_v28 }
  0x8a   :  { %1099 = vmatpush.bf16.msrb.mxu1 %v1535_v57 }
  0x8b   :  { %1110 = vmatpush.bf16.msrb.mxu2 %v1615_v51 }
  0x8c   :  { %1121 = vmatpush.bf16.msrb.mxu3 %v1695_v33 }
  0x8d   :  { %1087 = vmatpush.bf16.msrb.mxu0 %v1463_v49  ;;  %v1679_v49 = vor.u32 %v1819_v46, %v1676_v47 }
  0x8e   :  { %1100 = vmatpush.bf16.msrb.mxu1 %v1527_v6 }
  0x8f   :  { %1111 = vmatpush.bf16.msrb.mxu2 %v1607_v45 }
  0x90   :  { %1122 = vmatpush.bf16.msrb.mxu3 %v1687_v41 }
  0x91   :  { %1088 = vmatpush.bf16.msrb.mxu0 %v1455_v1  ;;  %v1671_v1 = vor.u32 %v1817_v63, %v1668_v0 }
  0x92   :  { %1101 = vmatpush.bf16.msrb.mxu1 %v1519_v20  ;;  %v1572_v20 = vld [vmem:[#allocation9 + $0x108] sm:$0xf0] }
  0x93   :  { %1112 = vmatpush.bf16.msrb.mxu2 %v1599_v59  ;;  %v1575_v23 = vor.u32 %v1793_v19, %v1572_v20 }
  0x94   :  { %1123 = vmatpush.bf16.msrb.mxu3 %v1679_v49 }
  0x95   :  { %1089 = vmatpush.bf16.msrb.mxu0 %v1447_v11  ;;  %v1663_v11 = vor.u32 %v1815_v7, %v1660_v8 }
  0x96   :  { %1102 = vmatpush.bf16.msrb.mxu1 %v1511_v32 }
  0x97   :  { %1113 = vmatpush.bf16.msrb.mxu2 %v1591_v5 }
  0x98   :  { %1124 = vmatpush.bf16.msrb.mxu3 %v1671_v1 }
  0x9b   :  { %1114 = vmatpush.bf16.msrb.mxu2 %v1583_v17 }
  0x9c   :  { %1125 = vmatpush.bf16.msrb.mxu3 %v1663_v11 }
  0x9f   :  { %1115 = vmatpush.bf16.msrb.mxu2 %v1575_v23  ;;  %v1833_v23 = vld [vmem:[#allocation3] ss:$0 sm:$0xff] }
  0xa0   :  { %1126 = vmatpush.bf16.msrb.mxu3 %v1655_v22 }
  0xa4   :  { %1127 = vmatpush.bf16.msrb.mxu3 %v1647_v26 }
  0xa8   :  { %1128 = vmatpush.bf16.msrb.mxu3 %v1639_v29 }
  0xb5   :  { %v500_v36 = vpop.f32.mrf.mxu0 }
  0xb6   :  { %v513_v38 = vpop.f32.mrf.mxu1 }
  0xb7   :  { %v514_v55 = vadd.f32 %v513_v38, %v500_v36 }
  0xb9   :  { %v620_v44 = vadd.f32 %v612_v37, %v514_v55  ;;  %v615_v37 = vperm.slane %v2015_v21, 3 }
  0xbb   :  { %vm624_vm0 = vcmp.gt.f32.partialorder %v620_v44, 0.0  ;;  %v628_v48 = vmul.f32 0.2, %v620_v44 }
  0xbd   :  { %v526_v50 = vpop.f32.mrf.mxu2  ;;  %v632_v56 = vsel %vm624_vm0, %v620_v44, %v628_v48  ;;  %v502_v58 = vpop.f32.mrf.mxu0 }
  0xbe   :  { %v539_v57 = vpop.f32.mrf.mxu3  ;;  %v636_v60 = vpack.c.bf16 %v632_v56, %v632_v56  ;;  %v515_v62 = vpop.f32.mrf.mxu1  ;;  %v704_v58 = vld [vmem:[%s2034_s4] sm:$0x3] }
  0xbf   :  { %v540_v61 = vadd.f32 %v539_v57, %v526_v50  ;;  %v706_v59 = vperm.slane %v704_v58, 0  ;;  %v707_v0 = vperm.slane %v704_v58, 1 }
  0xc0   :  { %1038 = vmatmul.bf16.vlgmr.msra.gmra.mxu0 %v636_v60 }
  0xc1   :  { %v621_v2 = vadd.f32 %v613_v52, %v540_v61 }
  0xc3   :  { %vm625_vm1 = vcmp.gt.f32.partialorder %v621_v2, 0.0  ;;  %v629_v6 = vmul.f32 0.2, %v621_v2 }
  0xc5   :  { %v633_v9 = vsel %vm625_vm1, %v621_v2, %v629_v6  ;;  %v528_v10 = vpop.f32.mrf.mxu2 }
  0xc6   :  { %v637_v15 = vpack.c.bf16 %v633_v9, %v633_v9  ;;  %v541_v16 = vpop.f32.mrf.mxu3  ;;  %v1140_v9 = vld [vmem:[%s2035_s5] sm:$0x3] }
  0xc7   :  { %v1142_v13 = vperm.slane %v1140_v9, 0  ;;  %v1143_v14 = vperm.slane %v1140_v9, 1 }
  0xc8   :  { %1051 = vmatmul.bf16.vlgmr.msra.gmra.mxu1 %v637_v15 }
  0xd0   :  { %1090 = vmatmul.bf16.vlgmr.msrb.gmra.mxu0 %v636_v60 }
  0xd5   :  { %v552_v30 = vpop.f32.mrf.mxu0 }
  0xd6   :  { %v565_v32 = vpop.f32.mrf.mxu1 }
  0xd7   :  { %v566_v33 = vadd.f32 %v565_v32, %v552_v30 }
  0xd8   :  { %1103 = vmatmul.bf16.vlgmr.msrb.gmra.mxu1 %v637_v15 }
  0xd9   :  { %v622_v34 = vadd.f32 %v614_v31, %v566_v33 }
  0xdb   :  { %vm626_vm2 = vcmp.gt.f32.partialorder %v622_v34, 0.0  ;;  %v630_v35 = vmul.f32 0.2, %v622_v34 }
  0xdd   :  { %v578_v36 = vpop.f32.mrf.mxu2  ;;  %v634_v51 = vsel %vm626_vm2, %v622_v34, %v630_v35  ;;  %v554_v39 = vpop.f32.mrf.mxu0 }
  0xde   :  { %v591_v38 = vpop.f32.mrf.mxu3  ;;  %v638_v40 = vpack.c.bf16 %v634_v51, %v634_v51  ;;  %v567_v41 = vpop.f32.mrf.mxu1 }
  0xdf   :  { %v592_v55 = vadd.f32 %v591_v38, %v578_v36 }
  0xe0   :  { %1064 = vmatmul.bf16.vlgmr.msra.gmra.mxu2 %v638_v40 }
  0xe1   :  { %v623_v42 = vadd.f32 %v615_v37, %v592_v55 }
  0xe3   :  { %vm627_vm3 = vcmp.gt.f32.partialorder %v623_v42, 0.0  ;;  %v631_v43 = vmul.f32 0.2, %v623_v42 }
  0xe5   :  { %v635_v44 = vsel %vm627_vm3, %v623_v42, %v631_v43  ;;  %v580_v45 = vpop.f32.mrf.mxu2 }
  0xe6   :  { %v639_v46 = vpack.c.bf16 %v635_v44, %v635_v44  ;;  %v593_v47 = vpop.f32.mrf.mxu3 }
  0xe8   :  { %1077 = vmatmul.bf16.vlgmr.msra.gmra.mxu3 %v639_v46 }
  0xf0   :  { %1116 = vmatmul.bf16.vlgmr.msrb.gmra.mxu2 %v638_v40 }
  0xf8   :  { %1129 = vmatmul.bf16.vlgmr.msrb.gmra.mxu3 %v639_v46 }
 0x13d   :  { %v1039_v48 = vpop.f32.mrf.mxu0 }
 0x13e   :  { %v1040_v62 = vadd.f32 %v1039_v48, %v706_v59 }
 0x145   :  { %v1052_v49 = vpop.f32.mrf.mxu1  ;;  %v1041_v21 = vpop.f32.mrf.mxu0 }
 0x146   :  { %v1053_v63 = vadd.f32 %v1052_v49, %v1040_v62 }
 0x14d   :  { %v1054_v50 = vpop.f32.mrf.mxu1  ;;  %v1091_v52 = vpop.f32.mrf.mxu0 }
 0x14e   :  { %v1092_v4 = vadd.f32 %v1091_v52, %v707_v0 }
 0x155   :  { %v1104_v53 = vpop.f32.mrf.mxu1  ;;  %v1093_v54 = vpop.f32.mrf.mxu0 }
 0x156   :  { %v1105_v6 = vadd.f32 %v1104_v53, %v1092_v4 }
 0x15d   :  { %v1106_v56 = vpop.f32.mrf.mxu1 }
 0x163   :  { %v1065_v57 = vpop.f32.mrf.mxu2 }
 0x164   :  { %v1066_v2 = vadd.f32 %v1065_v57, %v1053_v63 }
 0x16b   :  { %v1078_v60 = vpop.f32.mrf.mxu3  ;;  %v1067_v61 = vpop.f32.mrf.mxu2 }
 0x16c   :  { %v1079_v5 = vadd.f32 %v1078_v60, %v1066_v2 }
 0x16e   :  { %v1136_v7 = vmul.f32 0.2, %v1079_v5  ;;  %vm1134_vm4 = vcmp.gt.f32.partialorder %v1079_v5, 0.0 }
 0x170   :  { %v1138_v16 = vsel %vm1134_vm4, %v1079_v5, %v1136_v7 }
 0x171   :  { %v1146_v18 = vmul.f32 %v1142_v13, %v1138_v16 }
 0x173   :  { %v1080_v1 = vpop.f32.mrf.mxu3  ;;  %v1117_v3 = vpop.f32.mrf.mxu2 }
 0x174   :  { %v1118_v8 = vadd.f32 %v1117_v3, %v1105_v6 }
 0x17b   :  { %v1130_v10 = vpop.f32.mrf.mxu3  ;;  %v1119_v12 = vpop.f32.mrf.mxu2 }
 0x17c   :  { %v1131_v11 = vadd.f32 %v1130_v10, %v1118_v8 }
 0x17e   :  { %vm1135_vm5 = vcmp.gt.f32.partialorder %v1131_v11, 0.0  ;;  %v1137_v15 = vmul.f32 0.2, %v1131_v11 }
 0x180   :  { %v1139_v17 = vsel %vm1135_vm5, %v1131_v11, %v1137_v15 }
 0x181   :  { %v1147_v19 = vmul.f32 %v1143_v14, %v1139_v17 }
 0x183   :  { %v1132_v20 = vpop.f32.mrf.mxu3  ;;  %v1148_v22 = vadd.f32 %v1147_v19, %v1146_v18 }
 0x185   :  { %1149 = vadd.xlane.f32.xlu0 %v1148_v22 }
 0x1f8   :  { %v1150_v24 = vpop.xlane.xlu0 %1149 }
 0x1f9   :  { %v1155_v25 = vadd.f32 %v1833_v23, %v1150_v24 }
 0x1fb   :  { %v1696_v26 = vmul.f32 -1.442695, %v1155_v25 }
 0x1fd   :  { %1834 = vpow2.f32 %v1696_v26 }
 0x203   :  { %v1835_v27 = vpop.eup %1834 }
 0x204   :  { %v1159_v28 = vadd.f32 1.0, %v1835_v27 }
 0x206   :  { %1836 = vrcp.f32 %v1159_v28  ;;  %v1171_v32 = vand.u32 2147483648, %v1159_v28  ;;  %v1169_v34 = vand.u32 2147483647, %v1159_v28  ;;  %vm1165_vm7 = vweird.f32 %v1159_v28 }
 0x208   :  { %v1172_v36 = vor.u32 1.1754944e-38, %v1171_v32  ;;  %vm1170_vm10 = vcmp.eq.f32.partialorder %v1169_v34, 8.507059e+37 }
 0x20c   :  { %v1837_v29 = vpop.eup %1836 }
 0x20d   :  { %v1161_v30 = vmul.f32 %v1837_v29, %v1159_v28  ;;  %vm1166_vm6 = vweird.f32 %v1837_v29 }
 0x20e   :  { %vm1167_vm8 = vmor %vm1165_vm7, %vm1166_vm6 }
 0x20f   :  { %v1162_v31 = vsub.f32 1.0, %v1161_v30 }
 0x211   :  { %v1163_v33 = vmul.f32 %v1837_v29, %v1162_v31 }
 0x213   :  { %v1164_v35 = vadd.f32 %v1837_v29, %v1163_v33 }
 0x215   :  { %v1168_v37 = vsel %vm1167_vm8, %v1837_v29, %v1164_v35 }
 0x216   :  { %v1173_v51 = vsel %vm1170_vm10, %v1172_v36, %v1168_v37 }
 0x217   :  { %1176 = vst.msk [vmem:[%s2037_s7] sm:$0xff] %vm1175_vm9, %v1173_v51 }
 0x218   :  { %1181 = vsyncpa [#allocation5], 1 }
 0x219   :  { %1182 = vsyncpa [#allocation7], 1 }
 0x21a   :  { %1183 = vsyncpa [#allocation10], 1 }

</bundles_post_ra>
